<compile_context>
chip_gen: v5e
topology: v5e:2x2
jax: 0.10.0
libtpu: 0.0.40
codegen_flags: <defaults>
</compile_context>

<pallas_src>
import functools

import jax
import jax.numpy as jnp
from jax.experimental import pallas as pl
from jax.experimental.pallas import tpu as pltpu

DELTA = 0.6
GAMMA = 2.0
EPSILON = 1e-7
NUM_CLASSES = 4
LANES = 128


def _cdiv(a, b):
    return -(-a // b)


def _default_config():
    kind = ""
    try:
        kind = jax.devices()[0].device_kind.lower()
    except Exception:
        pass
    if "v5" in kind or "v6" in kind:
        # 128 MiB VMEM, single TensorCore: big tiles, no spatial split.
        return dict(tile_rows=2048, spatial_splits=1,
                    vmem_limit_bytes=80 * 1024 * 1024)
    # v7x (64 MiB VMEM / 2 TCs) and unknown chips: conservative tiles, 2-way split.
    return dict(tile_rows=1024, spatial_splits=2,
                vmem_limit_bytes=40 * 1024 * 1024)


def _afl_kernel(ypred_ref, ytrue_ref, out_ref, *, gamma, epsilon, num_classes,
                tiles_per_split, valid_rows, need_mask):
    """One (batch, spatial-split, spatial-tile) block.

    ypred_ref: (1, C, TR, 128) float  (clamped-then-softmaxed, as in torch)
    ytrue_ref: (1, TR, 128)    int    class labels (pad sentinel == C)
    out_ref:   (1, C, 8, 128)  f32    per-class partial sums, resident over t
    """
    p = pl.program_id(1)
    t = pl.program_id(2)

    @pl.when(t == 0)
    def _():
        out_ref[...] = jnp.zeros_like(out_ref)

    # Cast after the VMEM load (no wrapper-side HBM upcast of either input).
    yp = ypred_ref[0].astype(jnp.float32)          # (C, TR, 128)
    yt = ytrue_ref[0]                              # (TR, 128) integer
    yp = jnp.clip(yp, epsilon, 1.0 - epsilon)      # torch.clamp BEFORE softmax

    C = num_classes
    tr, lanes = yp.shape[1], yp.shape[2]

    # Softmax denominator over the (leading) channel axis — pure VPU/EUP over
    # full (8,128) vregs.  No max-subtraction: after the clamp yp is in
    # [eps, 1-eps] so exp(yp) is bounded in [1, e].
    e0 = jnp.exp(yp[0])                            # kept live: needed for p0
    sez = e0
    for c in range(1, C):
        sez = sez + jnp.exp(yp[c])
    log_sez = jnp.log(sez)                         # log_softmax_c = yp[c] - log_sez

    if need_mask:
        # Ragged last tile: Pallas block-pads reads with stale VMEM; mask with a
        # SELECT (where), so any NaN/Inf there is replaced, never multiplied.
        row0 = (p * tiles_per_split + t) * tr
        ridx = jax.lax.broadcasted_iota(jnp.int32, (tr, lanes), 0)
        valid = (row0 + ridx) < valid_rows

        def mask(x):
            return jnp.where(valid, x, 0.0)
    else:
        def mask(x):
            return x

    def tile_sum(x):
        # (TR,128) -> (8,128): fold over the leading (non-layout) axis only.
        return jnp.sum(x.reshape(tr // 8, 8, lanes), axis=0)

    # Background channel (c == 0): (1 - p0)^gamma * ce0.
    # The (1 - delta) scalar is applied in the wrapper, not per voxel.
    ce0 = (yt == 0).astype(jnp.float32) * (log_sez - yp[0])   # = -onehot0*log_softmax0
    one_minus_p0 = 1.0 - e0 * pl.reciprocal(sez)              # only class 0 needs probs
    if gamma == 2.0:
        bg = one_minus_p0 * (one_minus_p0 * ce0)
    elif gamma == 1.0:
        bg = one_minus_p0 * ce0
    elif gamma == 0.0:
        bg = ce0
    else:
        bg = jnp.power(one_minus_p0, gamma) * ce0
    out_ref[0, 0] += tile_sum(mask(bg))

    # Foreground channels (c > 0): plain CE.  delta/(C-1) applied in the wrapper.
    for c in range(1, C):
        out_ref[0, c] += tile_sum(
            mask((yt == c).astype(jnp.float32) * (log_sez - yp[c])))


def asymmetric_focal_loss(y_pred, y_true, *, delta=DELTA, gamma=GAMMA,
                          epsilon=EPSILON, num_classes=NUM_CLASSES,
                          tile_rows=None, spatial_splits=None,
                          vmem_limit_bytes=None):
    """y_pred: (B, C, D, H, W) float; y_true: (B, D, H, W) int -> (B, C) f32."""
    cfg = _default_config()
    tile_rows = cfg["tile_rows"] if tile_rows is None else tile_rows
    spatial_splits = cfg["spatial_splits"] if spatial_splits is None else spatial_splits
    vmem_limit_bytes = (cfg["vmem_limit_bytes"]
                        if vmem_limit_bytes is None else vmem_limit_bytes)

    B, C = y_pred.shape[0], y_pred.shape[1]
    assert C == num_classes
    S = 1
    for d in y_pred.shape[2:]:
        S *= d

    # Flatten spatial (free, row-major metadata only).  Keep label dtype as-is
    # when it is an 8/16/32-bit integer — no HBM upcast copy.
    yp = y_pred.reshape(B, C, S)
    yt = y_true.reshape(B, S)
    if yt.dtype.kind not in ("i", "u") or yt.dtype.itemsize > 4:
        yt = yt.astype(jnp.int32)
    label_align = {1: 32, 2: 16, 4: 8}[yt.dtype.itemsize]
    align = max(8, label_align)
    assert tile_rows % align == 0 and tile_rows > 0

    # Padding is needed ONLY when S is lane-misaligned or too small for one
    # aligned tile; the common case (S % 128 == 0, rows >= align) never copies.
    rows0 = _cdiv(S, LANES)
    target_rows = max(align, rows0)
    pad_elems = target_rows * LANES - S
    if pad_elems:
        # TODO(synk): lane-misaligned / tiny S still pays one HBM copy of y_pred here.
        yp = jnp.pad(yp, ((0, 0), (0, 0), (0, pad_elems)))
        yt = jnp.pad(yt, ((0, 0), (0, pad_elems)),
                     constant_values=num_classes)   # sentinel -> zero contribution
    rows = target_rows

    yp = yp.reshape(B, C, rows, LANES)
    yt = yt.reshape(B, rows, LANES)

    tr = min(tile_rows, (rows // align) * align)    # multiple of `align`, >= 8
    total_tiles = _cdiv(rows, tr)
    need_mask = (rows % tr) != 0                    # ragged last tile
    splits = (spatial_splits
              if spatial_splits > 1 and total_tiles % spatial_splits == 0 else 1)
    tiles_per_split = total_tiles // splits

    kernel = functools.partial(
        _afl_kernel, gamma=float(gamma), epsilon=float(epsilon),
        num_classes=int(num_classes), tiles_per_split=tiles_per_split,
        valid_rows=rows, need_mask=need_mask)

    partials = pl.pallas_call(
        kernel,
        out_shape=jax.ShapeDtypeStruct((B * splits, C, 8, LANES), jnp.float32),
        grid_spec=pltpu.PrefetchScalarGridSpec(
            num_scalar_prefetch=0,
            grid=(B, splits, tiles_per_split),
            in_specs=[
                pl.BlockSpec((1, C, tr, LANES),
                             lambda b, p, t: (b, 0, p * tiles_per_split + t, 0)),
                pl.BlockSpec((1, tr, LANES),
                             lambda b, p, t: (b, p * tiles_per_split + t, 0)),
            ],
            out_specs=pl.BlockSpec((1, C, 8, LANES),
                                   lambda b, p, t: (b * splits + p, 0, 0, 0)),
        ),
        compiler_params=pltpu.CompilerParams(
            dimension_semantics=("parallel", "parallel", "arbitrary"),
            vmem_limit_bytes=vmem_limit_bytes),
    )(yp, yt)

    # Tiny final reduce + ALL scalar factors hoisted here (out of the voxel domain).
    sums = jnp.sum(partials.reshape(B, splits, C, 8 * LANES), axis=(1, 3))
    class_scale = jnp.concatenate(
        [jnp.full((1,), 1.0 - delta, jnp.float32),
         jnp.full((num_classes - 1,), delta / (num_classes - 1), jnp.float32)])
    return sums * (class_scale / float(S))


def _reference(y_pred, y_true, delta, gamma, epsilon, num_classes):
    """Pure-JAX transliteration of the PyTorch forward (for verification)."""
    y_pred = jnp.clip(y_pred, epsilon, 1.0 - epsilon)
    onehot = jax.nn.one_hot(y_true, num_classes, axis=1, dtype=jnp.float32)
    log_sm = jax.nn.log_softmax(y_pred, axis=1)
    sm = jax.nn.softmax(y_pred, axis=1)
    ce = -onehot * log_sm
    bg = (1.0 - delta) * jnp.power(1.0 - sm[:, 0], gamma) * ce[:, 0]
    fg = delta * ce[:, 1:] / (num_classes - 1)
    loss = jnp.concatenate([bg[:, None], fg], axis=1)
    return jnp.mean(loss, axis=(2, 3, 4))


if __name__ == "__main__":
    key = jax.random.PRNGKey(0)
    k1, k2, k3, k4 = jax.random.split(key, 4)

    # Primary check: lane-aligned spatial size -> zero padding, no masking path.
    B, C, D, H, W = 2, NUM_CLASSES, 8, 16, 16           # S = 2048 -> 16 rows of 128
    y_pred = jax.random.normal(k1, (B, C, D, H, W), dtype=jnp.float32)
    y_true = jax.random.randint(k2, (B, D, H, W), 0, NUM_CLASSES, dtype=jnp.int32)
    out = jax.block_until_ready(asymmetric_focal_loss(y_pred, y_true))
    ref = _reference(y_pred, y_true, DELTA, GAMMA, EPSILON, NUM_CLASSES)
    assert out.shape == (B, NUM_CLASSES)
    assert jnp.allclose(out, ref, atol=1e-5, rtol=5e-5), (out, ref)

    # Secondary check: ragged last tile (in-kernel row mask) + 2-way spatial split.
    B2, D2, H2, W2 = 1, 4, 44, 32                        # S = 5632 -> 44 rows
    y_pred2 = jax.random.normal(k3, (B2, NUM_CLASSES, D2, H2, W2), jnp.float32)
    y_true2 = jax.random.randint(k4, (B2, D2, H2, W2), 0, NUM_CLASSES, jnp.int32)
    out2 = jax.block_until_ready(
        asymmetric_focal_loss(y_pred2, y_true2, tile_rows=8, spatial_splits=2))
    ref2 = _reference(y_pred2, y_true2, DELTA, GAMMA, EPSILON, NUM_CLASSES)
    assert jnp.allclose(out2, ref2, atol=1e-5, rtol=5e-5), (out2, ref2)

    print("KERNEL_OK")
</pallas_src>

<mosaic_0001>
module attributes {stable_mosaic.version = 11 : i64} {
  func.func @_afl_kernel(%arg0: i32, %arg1: i32, %arg2: i32, %arg3: memref<1x4x16x128xf32, #tpu.memory_space<vmem>>, %arg4: memref<1x16x128xi32, #tpu.memory_space<vmem>>, %arg5: memref<1x4x8x128xf32, #tpu.memory_space<vmem>>) attributes {dimension_semantics = [#tpu.dimension_semantics<parallel>, #tpu.dimension_semantics<parallel>, #tpu.dimension_semantics<arbitrary>], iteration_bounds = array<i64: 2, 1, 1>, scalar_prefetch = 0 : i64, scratch_operands = 0 : i64, tpu.core_type = #tpu.core_type<tc>, window_params = [{transform_indices = @transform_0, window_bounds = array<i64: 1, 4, 16, 128>}, {transform_indices = @transform_1, window_bounds = array<i64: 1, 16, 128>}, {transform_indices = @transform_2, window_bounds = array<i64: 1, 4, 8, 128>}]} {
    %c0_i32 = arith.constant 0 : i32
    %0 = arith.cmpi eq, %arg2, %c0_i32 : i32
    %1 = arith.extui %0 : i1 to i32
    %c0_i32_0 = arith.constant 0 : i32
    %2 = arith.cmpi ne, %1, %c0_i32_0 : i32
    scf.if %2 {
      %cst_43 = arith.constant 0.000000e+00 : f32
      %97 = vector.broadcast %cst_43 : f32 to vector<1x4x8x128xf32>
      %c0_44 = arith.constant 0 : index
      %c0_45 = arith.constant 0 : index
      %c0_46 = arith.constant 0 : index
      %c0_47 = arith.constant 0 : index
      %98 = vector.load %arg5[%c0_44, %c0_45, %c0_46, %c0_47] : memref<1x4x8x128xf32, #tpu.memory_space<vmem>>, vector<1x4x8x128xf32>
      tpu.vector_store %arg5[%c0_44, %c0_45, %c0_46, %c0_47], %97 {strides = array<i32>} : memref<1x4x8x128xf32, #tpu.memory_space<vmem>>, vector<1x4x8x128xf32>,
    } else {
    }
    %c0 = arith.constant 0 : index
    %c0_1 = arith.constant 0 : index
    %c0_2 = arith.constant 0 : index
    %c0_3 = arith.constant 0 : index
    %3 = vector.load %arg3[%c0, %c0_1, %c0_2, %c0_3] : memref<1x4x16x128xf32, #tpu.memory_space<vmem>>, vector<1x4x16x128xf32>
    %4 = vector.shape_cast %3 : vector<1x4x16x128xf32> to vector<4x16x128xf32>
    %c0_4 = arith.constant 0 : index
    %c0_5 = arith.constant 0 : index
    %c0_6 = arith.constant 0 : index
    %5 = vector.load %arg4[%c0_4, %c0_5, %c0_6] : memref<1x16x128xi32, #tpu.memory_space<vmem>>, vector<1x16x128xi32>
    %6 = vector.shape_cast %5 : vector<1x16x128xi32> to vector<16x128xi32>
    %cst = arith.constant 1.000000e-07 : f32
    %cst_7 = arith.constant 0.99999988 : f32
    %7 = vector.broadcast %cst : f32 to vector<4x16x128xf32>
    %8 = arith.maximumf %7, %4 : vector<4x16x128xf32>
    %9 = vector.broadcast %cst_7 : f32 to vector<4x16x128xf32>
    %10 = arith.minimumf %9, %8 : vector<4x16x128xf32>
    %11 = vector.extract_strided_slice %10 {offsets = [0, 0, 0], sizes = [1, 16, 128], strides = [1, 1, 1]} : vector<4x16x128xf32> to vector<1x16x128xf32>
    %12 = vector.shape_cast %11 : vector<1x16x128xf32> to vector<16x128xf32>
    %13 = math.exp %12 : vector<16x128xf32>
    %14 = vector.extract_strided_slice %10 {offsets = [1, 0, 0], sizes = [1, 16, 128], strides = [1, 1, 1]} : vector<4x16x128xf32> to vector<1x16x128xf32>
    %15 = vector.shape_cast %14 : vector<1x16x128xf32> to vector<16x128xf32>
    %16 = math.exp %15 : vector<16x128xf32>
    %17 = arith.addf %13, %16 : vector<16x128xf32>
    %18 = vector.extract_strided_slice %10 {offsets = [2, 0, 0], sizes = [1, 16, 128], strides = [1, 1, 1]} : vector<4x16x128xf32> to vector<1x16x128xf32>
    %19 = vector.shape_cast %18 : vector<1x16x128xf32> to vector<16x128xf32>
    %20 = math.exp %19 : vector<16x128xf32>
    %21 = arith.addf %17, %20 : vector<16x128xf32>
    %22 = vector.extract_strided_slice %10 {offsets = [3, 0, 0], sizes = [1, 16, 128], strides = [1, 1, 1]} : vector<4x16x128xf32> to vector<1x16x128xf32>
    %23 = vector.shape_cast %22 : vector<1x16x128xf32> to vector<16x128xf32>
    %24 = math.exp %23 : vector<16x128xf32>
    %25 = arith.addf %21, %24 : vector<16x128xf32>
    %26 = math.log %25 : vector<16x128xf32>
    %c0_i32_8 = arith.constant 0 : i32
    %27 = vector.broadcast %c0_i32_8 : i32 to vector<16x128xi32>
    %28 = arith.cmpi eq, %6, %27 : vector<16x128xi32>
    %29 = arith.extui %28 : vector<16x128xi1> to vector<16x128xi32>
    %30 = arith.sitofp %29 : vector<16x128xi32> to vector<16x128xf32>
    %31 = vector.extract_strided_slice %10 {offsets = [0, 0, 0], sizes = [1, 16, 128], strides = [1, 1, 1]} : vector<4x16x128xf32> to vector<1x16x128xf32>
    %32 = vector.shape_cast %31 : vector<1x16x128xf32> to vector<16x128xf32>
    %33 = arith.subf %26, %32 : vector<16x128xf32>
    %34 = arith.mulf %30, %33 : vector<16x128xf32>
    %35 = tpu.reciprocal %25 : vector<16x128xf32> -> vector<16x128xf32>
    %36 = arith.mulf %13, %35 : vector<16x128xf32>
    %cst_9 = arith.constant 1.000000e+00 : f32
    %37 = vector.broadcast %cst_9 : f32 to vector<16x128xf32>
    %38 = arith.subf %37, %36 : vector<16x128xf32>
    %39 = arith.mulf %38, %34 : vector<16x128xf32>
    %40 = arith.mulf %38, %39 : vector<16x128xf32>
    %c0_10 = arith.constant 0 : index
    %c0_11 = arith.constant 0 : index
    %c0_12 = arith.constant 0 : index
    %c0_13 = arith.constant 0 : index
    %41 = vector.load %arg5[%c0_10, %c0_11, %c0_12, %c0_13] : memref<1x4x8x128xf32, #tpu.memory_space<vmem>>, vector<1x1x8x128xf32>
    %42 = vector.shape_cast %41 : vector<1x1x8x128xf32> to vector<8x128xf32>
    %43 = vector.shape_cast %40 : vector<16x128xf32> to vector<2x8x128xf32>
    %cst_14 = arith.constant dense<0.000000e+00> : vector<8x128xf32>
    %44 = vector.multi_reduction <add>, %43, %cst_14 [0] : vector<2x8x128xf32> to vector<8x128xf32>
    %45 = arith.addf %42, %44 : vector<8x128xf32>
    %c0_15 = arith.constant 0 : index
    %c0_16 = arith.constant 0 : index
    %c0_17 = arith.constant 0 : index
    %c0_18 = arith.constant 0 : index
    %46 = vector.load %arg5[%c0_15, %c0_16, %c0_17, %c0_18] : memref<1x4x8x128xf32, #tpu.memory_space<vmem>>, vector<1x1x8x128xf32>
    %47 = vector.shape_cast %46 : vector<1x1x8x128xf32> to vector<8x128xf32>
    %48 = vector.shape_cast %45 : vector<8x128xf32> to vector<1x1x8x128xf32>
    tpu.vector_store %arg5[%c0_15, %c0_16, %c0_17, %c0_18], %48 {strides = array<i32>} : memref<1x4x8x128xf32, #tpu.memory_space<vmem>>, vector<1x1x8x128xf32>,
    %c0_19 = arith.constant 0 : index
    %c1 = arith.constant 1 : index
    %c0_20 = arith.constant 0 : index
    %c0_21 = arith.constant 0 : index
    %49 = vector.load %arg5[%c0_19, %c1, %c0_20, %c0_21] : memref<1x4x8x128xf32, #tpu.memory_space<vmem>>, vector<1x1x8x128xf32>
    %50 = vector.shape_cast %49 : vector<1x1x8x128xf32> to vector<8x128xf32>
    %c1_i32 = arith.constant 1 : i32
    %51 = vector.broadcast %c1_i32 : i32 to vector<16x128xi32>
    %52 = arith.cmpi eq, %6, %51 : vector<16x128xi32>
    %53 = arith.extui %52 : vector<16x128xi1> to vector<16x128xi32>
    %54 = arith.sitofp %53 : vector<16x128xi32> to vector<16x128xf32>
    %55 = vector.extract_strided_slice %10 {offsets = [1, 0, 0], sizes = [1, 16, 128], strides = [1, 1, 1]} : vector<4x16x128xf32> to vector<1x16x128xf32>
    %56 = vector.shape_cast %55 : vector<1x16x128xf32> to vector<16x128xf32>
    %57 = arith.subf %26, %56 : vector<16x128xf32>
    %58 = arith.mulf %54, %57 : vector<16x128xf32>
    %59 = vector.shape_cast %58 : vector<16x128xf32> to vector<2x8x128xf32>
    %cst_22 = arith.constant dense<0.000000e+00> : vector<8x128xf32>
    %60 = vector.multi_reduction <add>, %59, %cst_22 [0] : vector<2x8x128xf32> to vector<8x128xf32>
    %61 = arith.addf %50, %60 : vector<8x128xf32>
    %c0_23 = arith.constant 0 : index
    %c1_24 = arith.constant 1 : index
    %c0_25 = arith.constant 0 : index
    %c0_26 = arith.constant 0 : index
    %62 = vector.load %arg5[%c0_23, %c1_24, %c0_25, %c0_26] : memref<1x4x8x128xf32, #tpu.memory_space<vmem>>, vector<1x1x8x128xf32>
    %63 = vector.shape_cast %62 : vector<1x1x8x128xf32> to vector<8x128xf32>
    %64 = vector.shape_cast %61 : vector<8x128xf32> to vector<1x1x8x128xf32>
    tpu.vector_store %arg5[%c0_23, %c1_24, %c0_25, %c0_26], %64 {strides = array<i32>} : memref<1x4x8x128xf32, #tpu.memory_space<vmem>>, vector<1x1x8x128xf32>,
    %c0_27 = arith.constant 0 : index
    %c2 = arith.constant 2 : index
    %c0_28 = arith.constant 0 : index
    %c0_29 = arith.constant 0 : index
    %65 = vector.load %arg5[%c0_27, %c2, %c0_28, %c0_29] : memref<1x4x8x128xf32, #tpu.memory_space<vmem>>, vector<1x1x8x128xf32>
    %66 = vector.shape_cast %65 : vector<1x1x8x128xf32> to vector<8x128xf32>
    %c2_i32 = arith.constant 2 : i32
    %67 = vector.broadcast %c2_i32 : i32 to vector<16x128xi32>
    %68 = arith.cmpi eq, %6, %67 : vector<16x128xi32>
    %69 = arith.extui %68 : vector<16x128xi1> to vector<16x128xi32>
    %70 = arith.sitofp %69 : vector<16x128xi32> to vector<16x128xf32>
    %71 = vector.extract_strided_slice %10 {offsets = [2, 0, 0], sizes = [1, 16, 128], strides = [1, 1, 1]} : vector<4x16x128xf32> to vector<1x16x128xf32>
    %72 = vector.shape_cast %71 : vector<1x16x128xf32> to vector<16x128xf32>
    %73 = arith.subf %26, %72 : vector<16x128xf32>
    %74 = arith.mulf %70, %73 : vector<16x128xf32>
    %75 = vector.shape_cast %74 : vector<16x128xf32> to vector<2x8x128xf32>
    %cst_30 = arith.constant dense<0.000000e+00> : vector<8x128xf32>
    %76 = vector.multi_reduction <add>, %75, %cst_30 [0] : vector<2x8x128xf32> to vector<8x128xf32>
    %77 = arith.addf %66, %76 : vector<8x128xf32>
    %c0_31 = arith.constant 0 : index
    %c2_32 = arith.constant 2 : index
    %c0_33 = arith.constant 0 : index
    %c0_34 = arith.constant 0 : index
    %78 = vector.load %arg5[%c0_31, %c2_32, %c0_33, %c0_34] : memref<1x4x8x128xf32, #tpu.memory_space<vmem>>, vector<1x1x8x128xf32>
    %79 = vector.shape_cast %78 : vector<1x1x8x128xf32> to vector<8x128xf32>
    %80 = vector.shape_cast %77 : vector<8x128xf32> to vector<1x1x8x128xf32>
    tpu.vector_store %arg5[%c0_31, %c2_32, %c0_33, %c0_34], %80 {strides = array<i32>} : memref<1x4x8x128xf32, #tpu.memory_space<vmem>>, vector<1x1x8x128xf32>,
    %c0_35 = arith.constant 0 : index
    %c3 = arith.constant 3 : index
    %c0_36 = arith.constant 0 : index
    %c0_37 = arith.constant 0 : index
    %81 = vector.load %arg5[%c0_35, %c3, %c0_36, %c0_37] : memref<1x4x8x128xf32, #tpu.memory_space<vmem>>, vector<1x1x8x128xf32>
    %82 = vector.shape_cast %81 : vector<1x1x8x128xf32> to vector<8x128xf32>
    %c3_i32 = arith.constant 3 : i32
    %83 = vector.broadcast %c3_i32 : i32 to vector<16x128xi32>
    %84 = arith.cmpi eq, %6, %83 : vector<16x128xi32>
    %85 = arith.extui %84 : vector<16x128xi1> to vector<16x128xi32>
    %86 = arith.sitofp %85 : vector<16x128xi32> to vector<16x128xf32>
    %87 = vector.extract_strided_slice %10 {offsets = [3, 0, 0], sizes = [1, 16, 128], strides = [1, 1, 1]} : vector<4x16x128xf32> to vector<1x16x128xf32>
    %88 = vector.shape_cast %87 : vector<1x16x128xf32> to vector<16x128xf32>
    %89 = arith.subf %26, %88 : vector<16x128xf32>
    %90 = arith.mulf %86, %89 : vector<16x128xf32>
    %91 = vector.shape_cast %90 : vector<16x128xf32> to vector<2x8x128xf32>
    %cst_38 = arith.constant dense<0.000000e+00> : vector<8x128xf32>
    %92 = vector.multi_reduction <add>, %91, %cst_38 [0] : vector<2x8x128xf32> to vector<8x128xf32>
    %93 = arith.addf %82, %92 : vector<8x128xf32>
    %c0_39 = arith.constant 0 : index
    %c3_40 = arith.constant 3 : index
    %c0_41 = arith.constant 0 : index
    %c0_42 = arith.constant 0 : index
    %94 = vector.load %arg5[%c0_39, %c3_40, %c0_41, %c0_42] : memref<1x4x8x128xf32, #tpu.memory_space<vmem>>, vector<1x1x8x128xf32>
    %95 = vector.shape_cast %94 : vector<1x1x8x128xf32> to vector<8x128xf32>
    %96 = vector.shape_cast %93 : vector<8x128xf32> to vector<1x1x8x128xf32>
    tpu.vector_store %arg5[%c0_39, %c3_40, %c0_41, %c0_42], %96 {strides = array<i32>} : memref<1x4x8x128xf32, #tpu.memory_space<vmem>>, vector<1x1x8x128xf32>,
    return
  }
  func.func @transform_0(%arg0: i32, %arg1: i32, %arg2: i32) -> (i32, i32, i32, i32) {
    %c1_i32 = arith.constant 1 : i32
    %0 = arith.muli %arg1, %c1_i32 : i32
    %1 = arith.addi %0, %arg2 : i32
    %c0_i32 = arith.constant 0 : i32
    %c0_i32_0 = arith.constant 0 : i32
    %c0_i32_1 = arith.constant 0 : i32
    return %arg0, %c0_i32, %1, %c0_i32_0 : i32, i32, i32, i32
  }
  func.func @transform_1(%arg0: i32, %arg1: i32, %arg2: i32) -> (i32, i32, i32) {
    %c1_i32 = arith.constant 1 : i32
    %0 = arith.muli %arg1, %c1_i32 : i32
    %1 = arith.addi %0, %arg2 : i32
    %c0_i32 = arith.constant 0 : i32
    %c0_i32_0 = arith.constant 0 : i32
    return %arg0, %1, %c0_i32 : i32, i32, i32
  }
  func.func @transform_2(%arg0: i32, %arg1: i32, %arg2: i32) -> (i32, i32, i32, i32) {
    %c1_i32 = arith.constant 1 : i32
    %0 = arith.muli %arg0, %c1_i32 : i32
    %1 = arith.addi %0, %arg1 : i32
    %c0_i32 = arith.constant 0 : i32
    %c0_i32_0 = arith.constant 0 : i32
    %c0_i32_1 = arith.constant 0 : i32
    %c0_i32_2 = arith.constant 0 : i32
    return %1, %c0_i32, %c0_i32_0, %c0_i32_1 : i32, i32, i32, i32
  }
}

</mosaic_0001>

<bundles_post_ra>
// kernel: tpu_custom_call.1
= control target key start
LH: loop header
LB: loop body
LE: loop exit
PB: predicated region body
PF: predicated region fallthrough
CT: control target
= control target key end

     0   :  { %7 = vsyncpa [#allocation3], 0  ;;  %s1053_s0 = inlined_call_operand.hbm [shape: f32[2,4,16,128], index: 0, kind: input, shape index: {}]   ;;  %s1054_s1 = inlined_call_operand.hbm [shape: s32[2,16,128], index: 1, kind: input, shape index: {}]   ;;  %s1055_s2 = inlined_call_operand.hbm [shape: f32[2,4,8,128], index: 2, kind: output, shape index: {}]  }
   0x1   :  { %9 = vsyncpa [#allocation3 + $0x1], 0 }
   0x2   :  { %10 = vsyncpa [#allocation6], 0 }
   0x3   :  { %12 = vsyncpa [#allocation6 + $0x1], 0 }
   0x4   :  { %13 = vsyncpa [#allocation4], 0 }
   0x5   :  { %15 = vsyncpa [#allocation4 + $0x1], 0  ;;  %s834_s9 = smov 0   ;;  %s836_s10 = smov 0  }
   0x6   :  { %s838_s11 = smov 0   ;;  %s840_s12 = smov 0  }
   0x7   :  { %s842_s13 = smov 0   ;;  %s844_s14 = smov 0  }
   0x8 LB: > { %s534_s15 = sadd.s32 4294967295, %s812_s14   ;;  %s535_s16 = sadd.s32 4294967294, %s812_s14   ;;  %s812_s14 = sphi %s844_s14, %s21_s14   ;;  %s808_s13 = sphi %s842_s13, %s1071_s13   ;;  %s804_s12 = sphi %s840_s12, %s1070_s12   ;;  %s800_s11 = sphi %s838_s11, %s1069_s11   ;;  %s796_s10 = sphi %s836_s10, %s1068_s10   ;;  %s792_s9 = sphi %s834_s9, %s1067_s9  }
   0x9   : > { %s40_s17 = sadd.s32 1, %s808_s13  ;;  %s51_s18 = sadd.s32 1, %s800_s11 }
   0xa   : > { %p42_p0 = scmp.ge.s32.totalorder %s40_s17, 2  ;;  %p58_p1 = scmp.ne.s32.totalorder %s800_s11, %s796_s10 }
   0xb   : > { %p59_p2 = scmp.eq.s32.totalorder %s812_s14, 0  ;;  %p64_p3 = scmp.ne.s32.totalorder %s796_s10, %s792_s9 }
   0xc   : > { %s1073_s17 = smov (%p42_p0, %s40_s17), 0  ;;  %p65_p5 = scmp.eq.s32.totalorder %s534_s15, 0 }
   0xd   : > { %p875_p4 = por %p59_p2, %p58_p1  ;;  %s46_s20 = ssub.s32 %s808_s13, %s1073_s17 }
   0xe   : > { %p120_p6 = scmp.eq.s32.totalorder %s534_s15, 1  ;;  %p49_p7 = scmp.eq.s32.totalorder %s46_s20, 0 }
   0xf   : > { %p881_p8 = por %p65_p5, %p64_p3  ;;  %p126_p10 = scmp.eq.s32.totalorder %s535_s16, 1 }
  0x10   : > { %p885_p9 = por %p120_p6, %p58_p1  ;;  %p537_p12 = scmp.ge.s32.totalorder %s812_s14, 2 }
  0x11   : > { %s890_s23 = scalar_select %p49_p7, %s800_s11, %s51_s18  }
  0x12   : > { %p892_p11 = por %p126_p10, %p64_p3  ;;  %p587_p13 = scmp.lt.s32.totalorder %s812_s14, 2 }
  0x13   : > { %s899_s25 = sand.u32 1, %s800_s11   ;;  %s567_s27 = sshll.u32 %s808_s13, 6 }
  0x14   : > { %s538_s26 = sshll.u32 %s899_s25, 6  ;;  %s158_s30 = scalar_lea.hbm %s1053_s0, %s567_s27 }
  0x15   : > { %s150_s3 = scalar_lea.vmem [#allocation2], %s538_s26  ;;  %s159_s5 = sshll.u32 %s158_s30, 4  ;;  %s160_s5 = int_to_ptr.hbm [resolvable:$true] %s159_s5 }
  0x16   : > { %s161_s4 = sshll.u32 %s150_s3, 4  ;;  %p908_p0 = pnand %p587_p13, %p875_p4  ;;  %s162_s4 = int_to_ptr.vmem [resolvable:$true] %s161_s4 }
  0x17   : > { %p544_p1 = scmp.ge.s32.totalorder %s812_s14, 1  ;;  %s147_s7 = scalar_lea.sflag [#allocation3], %s899_s25 }
  0x18   : > { %s814_s8 = smov 128   ;;  %s815_s15 = smov 8  }
  0x19   : > { %579 = dma.hbm_to_vmem [thread:$0]  (!%p908_p0), %s160_s5, 1024, %s162_s4, %s147_s7, %s814_s8, %s814_s8, %s815_s15  }
  0x1a   : > { %p194_p2 = scmp.lt.s32.totalorder %s812_s14, 3  ;;  %s541_s16 = sshll.u32 %s899_s25, 4 }
  0x1b   : > { %s568_s18 = sshll.u32 %s808_s13, 4  ;;  %s175_s27 = scalar_lea.vmem [#allocation5], %s541_s16 }
  0x1c   : > { %p195_p3 = pnand %p544_p1, %p194_p2  ;;  %s183_s19 = scalar_lea.hbm %s1054_s1, %s568_s18 }
  0x1d   : > { %s186_s28 = sshll.u32 %s175_s27, 4  ;;  %s184_s29 = sshll.u32 %s183_s19, 4  ;;  %s187_s28 = int_to_ptr.vmem [resolvable:$true] %s186_s28  ;;  %s185_s29 = int_to_ptr.hbm [resolvable:$true] %s184_s29 }
  0x1e   : > { %s172_s30 = scalar_lea.sflag [#allocation6], %s899_s25  ;;  %198 = sbr.rel (%p195_p3) target bundleno = 97 (0x61), region = 28 }
  0x1f   : > { %582 = dma.hbm_to_vmem [thread:$0]  (!%p908_p0), %s185_s29, 256, %s187_s28, %s172_s30, %s814_s8, %s814_s8, %s815_s15  }
  0x20   : > { %s926_s3 = sand.u32 (!%p195_p3), 1, %s796_s10  }
  0x21   : > { %s545_s4 = sshll.u32 (!%p195_p3), %s926_s3, 6  ;;  %s201_s5 = scalar_lea.sflag (!%p195_p3), [#allocation3], %s926_s3 }
  0x22   : > { %s204_s7 = scalar_lea.vmem (!%p195_p3), [#allocation2], %s545_s4 }
  0x23   : > { %779 = dma.done.wait (%p881_p8), %s201_s5, 1024  }
  0x24   : > { %781 = vsyncadd (%p881_p8), %s201_s5, 4294966272  ;;  %s546_s25 = sshll.u32 %s926_s3, 4  ;;  %s211_s6 = scalar_lea.sflag [#allocation6], %s926_s3 }
  0x25   : > { %s936_s8 = scalar_lea.vmem [#allocation5], %s546_s25 }
  0x26   : > { %783 = dma.done.wait (%p881_p8), %s211_s6, 256  }
  0x27   : > { %785 = vsyncadd (%p881_p8), %s211_s6, 4294967040  ;;  %v254_v0 = vld [vmem:[%s204_s7] sm:$0xff]  ;;  %v255_v1 = vld [vmem:[%s204_s7 + $0x8] sm:$0xff]  ;;  %v816_v48 = vmov 0.0   ;;  %s547_s21 = sshll.u32 %s926_s3, 5  ;;  %s569_s16 = sshll.u32 %s804_s12, 5 }
  0x28   : > { %v256_v2 = vld [vmem:[%s204_s7 + $0x10] sm:$0xff]  ;;  %v257_v3 = vld [vmem:[%s204_s7 + $0x18] sm:$0xff]  ;;  %v258_v4 = vld [vmem:[%s204_s7 + $0x20] sm:$0xff]  ;;  %v264_v6 = vmax.f32 %v254_v0, 1e-07  ;;  %s240_s15 = scalar_lea.vmem [#allocation7], %s547_s21  ;;  %s414_s26 = scalar_lea.hbm %s1055_s2, %s569_s16 }
  0x29   : > { %v259_v5 = vld [vmem:[%s204_s7 + $0x28] sm:$0xff]  ;;  %v260_v7 = vld [vmem:[%s204_s7 + $0x30] sm:$0xff]  ;;  %v261_v8 = vld [vmem:[%s204_s7 + $0x38] sm:$0xff]  ;;  %v265_v9 = vmax.f32 %v255_v1, 1e-07  ;;  %s415_s19 = sshll.u32 %s240_s15, 4  ;;  %s416_s19 = int_to_ptr.vmem [resolvable:$true] %s415_s19 }
  0x2a   : > { %v266_v10 = vmax.f32 %v256_v2, 1e-07  ;;  %v267_v11 = vmax.f32 %v257_v3, 1e-07  ;;  %v268_v12 = vmax.f32 %v258_v4, 1e-07 }
  0x2b   : > { %v269_v13 = vmax.f32 %v259_v5, 1e-07  ;;  %v270_v14 = vmax.f32 %v260_v7, 1e-07  ;;  %v271_v15 = vmax.f32 %v261_v8, 1e-07 }
  0x2c   : > { %v942_v16 = vmin.f32 %v264_v6, 0.9999999  ;;  %v944_v17 = vmin.f32 %v265_v9, 0.9999999  ;;  %v946_v18 = vmin.f32 %v266_v10, 0.9999999 }
  0x2d   : > { %v948_v19 = vmin.f32 %v267_v11, 0.9999999  ;;  %v950_v20 = vmin.f32 %v268_v12, 0.9999999  ;;  %v952_v21 = vmin.f32 %v269_v13, 0.9999999 }
  0x2e   : > { %v954_v22 = vmin.f32 %v270_v14, 0.9999999  ;;  %v280_v23 = vmul.f32 1.442695, %v942_v16  ;;  %v282_v24 = vmul.f32 1.442695, %v944_v17 }
  0x2f   : > { %v284_v25 = vmul.f32 1.442695, %v946_v18  ;;  %v959_v26 = vmin.f32 %v271_v15, 0.9999999  ;;  %v286_v27 = vmul.f32 1.442695, %v948_v19 }
  0x30   : > { %642 = vpow2.f32 %v280_v23  ;;  %v290_v28 = vmul.f32 1.442695, %v950_v20  ;;  %v292_v29 = vmul.f32 1.442695, %v952_v21  ;;  %v296_v30 = vmul.f32 1.442695, %v954_v22 }
  0x31   : > { %644 = vpow2.f32 %v282_v24  ;;  %v298_v31 = vmul.f32 1.442695, %v959_v26  ;;  %v262_v45 = vld [vmem:[%s936_s8] sm:$0xff]  ;;  %v974_v47 = vld [vmem:[%s936_s8 + $0x8] sm:$0xff]  ;;  %s417_s27 = sshll.u32 %s414_s26, 4  ;;  %s402_s28 = scalar_lea.sflag [#allocation4], %s926_s3  ;;  %s418_s27 = int_to_ptr.hbm [resolvable:$true] %s417_s27 }
  0x32   : > { %646 = vpow2.f32 %v284_v25  ;;  %vm306_vm0 = vcmp.eq.s32.totalorder %v262_v45, 0  ;;  %vm358_vm1 = vcmp.eq.s32.totalorder %v262_v45, 1  ;;  %vm359_vm2 = vcmp.eq.s32.totalorder %v974_v47, 1  ;;  %s740_s12 = sshra.s32 %s418_s27, 4  ;;  %s746_s5 = scalar_lea.hbm %s1055_s2, 64  ;;  %s741_s12 = int_to_ptr.hbm [resolvable:$true] %s740_s12 }
  0x33   : > { %648 = vpow2.f32 %v286_v27  ;;  %vm373_vm3 = vcmp.eq.s32.totalorder %v262_v45, 2  ;;  %vm374_vm4 = vcmp.eq.s32.totalorder %v974_v47, 2  ;;  %vm388_vm5 = vcmp.eq.s32.totalorder %v262_v45, 3  ;;  %s742_s29 = scalar_lea.hbm %s741_s12, 32  ;;  %p747_p7 = scmp.lt.s32.totalorder %s741_s12, %s1055_s2 }
  0x34   : > { %650 = vpow2.f32 %v290_v28  ;;  %v548_v49 = vsel %vm306_vm0, 1.0, %v816_v48  ;;  %vm389_vm6 = vcmp.eq.s32.totalorder %v974_v47, 3  ;;  %vm307_vm7 = vcmp.eq.s32.totalorder %v974_v47, 0  ;;  %p743_p4 = scmp.ne.s32.totalorder %s741_s12, %s742_s29  ;;  %p748_p8 = scmp.lt.s32.totalorder %s746_s5, %s742_s29 }
  0x35   : > { %652 = vpow2.f32 %v292_v29  ;;  %v551_v54 = vsel %vm358_vm1, 1.0, %v816_v48  ;;  %v552_v55 = vsel %vm359_vm2, 1.0, %v816_v48  ;;  %v555_v58 = vsel %vm373_vm3, 1.0, %v816_v48 }
  0x36   : > { %v966_v32 = vpop.eup %642  ;;  %654 = vpow2.f32 %v296_v30  ;;  %v556_v59 = vsel %vm374_vm4, 1.0, %v816_v48  ;;  %v559_v60 = vsel %vm388_vm5, 1.0, %v816_v48  ;;  %v560_v63 = vsel %vm389_vm6, 1.0, %v816_v48  ;;  %p744_p5 = pnand %p743_p4, %p885_p9  ;;  %p749_p10 = por %p748_p8, %p747_p7 }
  0x37   : > { %v968_v33 = vpop.eup %644  ;;  %656 = vpow2.f32 %v298_v31 }
  0x38   : > { %v647_v34 = vpop.eup %646  ;;  %p745_p6 = pneg %p744_p5 }
  0x39   : > { %v649_v35 = vpop.eup %648  ;;  %v288_v36 = vadd.f32 %v647_v34, %v966_v32 }
  0x3a   : > { %v651_v37 = vpop.eup %650  ;;  %v289_v38 = vadd.f32 %v649_v35, %v968_v33  ;;  %v549_v35 = vsel %vm307_vm7, 1.0, %v816_v48  ;;  %p750_p13 = pnand %p749_p10, %p745_p6 }
  0x3b   : > { %v653_v39 = vpop.eup %652  ;;  %v294_v40 = vadd.f32 %v651_v37, %v288_v36 }
  0x3c   : > { %v655_v41 = vpop.eup %654  ;;  %v295_v42 = vadd.f32 %v653_v39, %v289_v38 }
  0x3d   : > { %v657_v43 = vpop.eup %656  ;;  %v300_v44 = vadd.f32 %v655_v41, %v294_v40 }
  0x3e   : > { %v301_v46 = vadd.f32 %v657_v43, %v295_v42 }
  0x3f   : > { %658 = vlog2.f32 %v300_v44  ;;  %v325_v50 = vand.u32 2147483647, %v300_v44  ;;  %v327_v52 = vand.u32 2147483648, %v300_v44  ;;  %vm321_vm8 = vweird.f32 %v300_v44 }
  0x40   : > { %660 = vlog2.f32 %v301_v46  ;;  %v339_v53 = vand.u32 2147483647, %v301_v46  ;;  %vm335_vm9 = vweird.f32 %v301_v46  ;;  %v341_v3 = vand.u32 2147483648, %v301_v46 }
  0x41   : > { %662 = vrcp.f32 %v300_v44  ;;  %vm982_vm10 = vcmp.eq.f32.partialorder %v325_v50, 8.507059e+37  ;;  %v328_v5 = vor.u32 1.1754944e-38, %v327_v52 }
  0x42   : > { %664 = vrcp.f32 %v301_v46  ;;  %vm987_vm11 = vcmp.eq.f32.partialorder %v339_v53, 8.507059e+37  ;;  %v342_v27 = vor.u32 1.1754944e-38, %v341_v3 }
  0x45   : > { %v659_v51 = vpop.eup %658 }
  0x46   : > { %v661_v56 = vpop.eup %660  ;;  %v303_v57 = vmul.f32 0.6931472, %v659_v51 }
  0x47   : > { %v663_v61 = vpop.eup %662  ;;  %v305_v62 = vmul.f32 0.6931472, %v661_v56 }
  0x48   : > { %v665_v0 = vpop.eup %664  ;;  %v317_v1 = vmul.f32 %v663_v61, %v300_v44  ;;  %v364_v4 = vsub.f32 %v303_v57, %v946_v18  ;;  %vm322_vm12 = vweird.f32 %v663_v61  ;;  %v379_v11 = vsub.f32 %v303_v57, %v950_v20 }
  0x49   : > { %v331_v6 = vmul.f32 %v665_v0, %v301_v46  ;;  %v365_v8 = vsub.f32 %v305_v62, %v948_v19  ;;  %vm336_vm13 = vweird.f32 %v665_v0  ;;  %v380_v14 = vsub.f32 %v305_v62, %v952_v21  ;;  %vm998_vm14 = vmor %vm321_vm8, %vm322_vm12 }
  0x4a   : > { %v318_v9 = vsub.f32 1.0, %v317_v1  ;;  %v366_v10 = vmul.f32 %v551_v54, %v364_v4  ;;  %v381_v18 = vmul.f32 %v555_v58, %v379_v11  ;;  %v394_v23 = vsub.f32 %v303_v57, %v954_v22  ;;  %vm337_vm15 = vmor %vm335_vm9, %vm336_vm13 }
  0x4b   : > { %v332_v12 = vsub.f32 1.0, %v331_v6  ;;  %v367_v13 = vmul.f32 %v552_v55, %v365_v8  ;;  %v395_v24 = vsub.f32 %v305_v62, %v959_v26  ;;  %v382_v28 = vmul.f32 %v556_v59, %v380_v14 }
  0x4c   : > { %v319_v15 = vmul.f32 %v663_v61, %v318_v9  ;;  %v312_v29 = vsub.f32 %v303_v57, %v942_v16  ;;  %v396_v21 = vmul.f32 %v559_v60, %v394_v23  ;;  %v313_v22 = vsub.f32 %v305_v62, %v944_v17 }
  0x4d   : > { %v333_v25 = vmul.f32 %v665_v0, %v332_v12  ;;  %v368_v20 = vadd.f32 %v367_v13, %v366_v10  ;;  %v397_v31 = vmul.f32 %v560_v63, %v395_v24  ;;  %v383_v34 = vadd.f32 %v382_v28, %v381_v18 }
  0x4e   : > { %v320_v30 = vadd.f32 %v663_v61, %v319_v15  ;;  %v314_v39 = vmul.f32 %v548_v49, %v312_v29  ;;  %v315_v41 = vmul.f32 %v549_v35, %v313_v22 }
  0x4f   : > { %v334_v26 = vadd.f32 %v665_v0, %v333_v25  ;;  %v398_v37 = vadd.f32 %v397_v31, %v396_v21  ;;  %553 = vst [vmem:[%s240_s15 + $0x8] sm:$0xff] %v368_v20 }
  0x50   : > { %v324_v36 = vsel %vm998_vm14, %v663_v61, %v320_v30  ;;  %557 = vst [vmem:[%s240_s15 + $0x10] sm:$0xff] %v383_v34 }
  0x51   : > { %v329_v16 = vsel %vm982_vm10, %v328_v5, %v324_v36  ;;  %v338_v38 = vsel %vm337_vm15, %v665_v0, %v334_v26  ;;  %561 = vst [vmem:[%s240_s15 + $0x18] sm:$0xff] %v398_v37 }
  0x52   : > { %v343_v17 = vsel %vm987_vm11, %v342_v27, %v338_v38  ;;  %v344_v40 = vmul.f32 %v966_v32, %v329_v16 }
  0x53   : > { %v345_v42 = vmul.f32 %v968_v33, %v343_v17 }
  0x54   : > { %v346_v43 = vsub.f32 1.0, %v344_v40 }
  0x55   : > { %v347_v44 = vsub.f32 1.0, %v345_v42 }
  0x56   : > { %v348_v45 = vmul.f32 %v346_v43, %v314_v39 }
  0x57   : > { %v349_v46 = vmul.f32 %v347_v44, %v315_v41 }
  0x58   : > { %v350_v47 = vmul.f32 %v348_v45, %v346_v43 }
  0x59   : > { %v351_v48 = vmul.f32 %v349_v46, %v347_v44 }
  0x5b   : > { %v353_v32 = vadd.f32 %v351_v48, %v350_v47 }
  0x5d   : > { %355 = vst [vmem:[%s240_s15] sm:$0xff] %v353_v32 }
  0x5e   : > { %753 = shalt.err (!%p750_p13)
}
  0x5f   : > { %s817_s3 = smov 128   ;;  %s818_s6 = smov 8  }
  0x60   : > { %574 = dma.vmem_to_hbm [thread:$0]  (%p885_p9), %s416_s19, 512, %s418_s27, %s402_s28, %s817_s3, %s817_s3, %s818_s6  }
  0x61 PF: > { %s432_s8 = sand.u32 1, %s792_s9   ;;  %p584_p0 = pnand %p537_p12, %p892_p11 }
  0x62   : > { %s433_s21 = scalar_lea.sflag [#allocation4], %s432_s8 }
  0x63   : > { %p585_p1 = pneg %p584_p0 }
  0x65   : > { %787 = dma.done.wait (%p585_p1), %s433_s21, 512  }
  0x66   : > { %789 = vsyncadd (%p585_p1), %s433_s21, 4294966784  ;;  %s21_s14 = sadd.s32 1, %s812_s14   ;;  %s1067_s9 = smov %s796_s10 }
  0x67   : > { %p18_p2 = scmp.ge.s32.totalorder %s21_s14, 4   ;;  %s1068_s10 = smov %s800_s11 }
  0x68   : > { %s1069_s11 = smov %s890_s23  ;;  %s1070_s12 = smov %s808_s13 }
  0x69   : > { %s1071_s13 = smov %s1073_s17  ;;  %20 = sbr.rel (!%p18_p2) target bundleno = 8 (0x8), region = 93 }
  0x6e   :  { %439 = vsyncpa [#allocation3], 1 }
  0x6f   :  { %441 = vsyncpa [#allocation3 + $0x1], 1 }
  0x70   :  { %442 = vsyncpa [#allocation6], 1 }
  0x71   :  { %444 = vsyncpa [#allocation6 + $0x1], 1 }
  0x72   :  { %445 = vsyncpa [#allocation4], 1 }
  0x73   :  { %447 = vsyncpa [#allocation4 + $0x1], 1 }

</bundles_post_ra>
